<compile_context>
chip_gen: v6e
topology: v6e:2x2x1
jax: 0.10.0
libtpu: 0.0.40
codegen_flags: <defaults>
</compile_context>

<pallas_src>
import functools

import jax
import jax.numpy as jnp
from jax.experimental import pallas as pl
from jax.experimental.pallas import tpu as pltpu

SMOOTH = 1e-4        # self.smooth
_NEG_LOGIT = -1e9    # padding logit: exp(-1e9 - m) underflows to 0 in f32

# TODO(synk): the OHEM branch (ohem_ratio > 0: per-class sort / masked_select /
# threshold) and the optional `mask` forward argument are not implemented; the
# default config (ohem_ratio=0.0, mask=None) never reaches them.


def _round_up(v: int, m: int) -> int:
    return ((v + m - 1) // m) * m


def _lane_fold(a):
    """(C, T) -> (C, 128): tree-sum 128-lane groups with VALU adds only.

    Static 128-aligned slices are free vreg selections; the final cross-lane
    reduce of the remaining 128 lanes is deferred to the JAX epilogue.
    """
    t = a.shape[1]
    if t == 128:
        return a
    groups = t // 128
    left = (groups // 2) * 128
    return _lane_fold(a[:, :left]) + _lane_fold(a[:, left:])


def _dice_kernel(x_ref, t_ref, inter_ref, psum_ref, tsum_ref, *,
                 n_inner, first_pad_tile):
    """One token tile. x_ref: (C_pad, T) logits, t_ref: (1, T) int32 labels.

    inter/psum/tsum refs: (C_pad, 128) f32 per-chunk partial-sum accumulators
    (output blocks, resident across the inner 'arbitrary' grid axis).
    """
    chunk = pl.program_id(0)
    step = pl.program_id(1)

    @pl.when(step == 0)
    def _init():
        inter_ref[...] = jnp.zeros_like(inter_ref)
        psum_ref[...] = jnp.zeros_like(psum_ref)
        tsum_ref[...] = jnp.zeros_like(tsum_ref)

    x = x_ref[...].astype(jnp.float32)      # (C_pad, T); bf16 in -> f32 math
    t = t_ref[...]                          # (1, T) int32; -1 marks padding

    # Softmax over the class (sublane) axis — per token, fully inside the tile.
    m = jnp.max(x, axis=0, keepdims=True)   # (1, T)
    e = jnp.exp(x - m)                      # (C_pad, T)
    p = e * pl.reciprocal(jnp.sum(e, axis=0, keepdims=True), approx=True)

    c_pad, tile = x.shape
    cls = jax.lax.broadcasted_iota(jnp.int32, (c_pad, tile), 0)
    onehot = (cls == t).astype(jnp.float32)  # padded tokens (t == -1) -> all 0

    # inter / tsum never see padded-token contributions (onehot is 0 there).
    inter_ref[...] += _lane_fold(p * onehot)
    tsum_ref[...] += _lane_fold(onehot)

    if first_pad_tile is None:
        # No padded tokens anywhere: unmasked everywhere (hot path only).
        psum_ref[...] += _lane_fold(p)
    else:
        gidx = chunk * n_inner + step        # global tile index

        @pl.when(gidx < first_pad_tile)
        def _interior():                     # unmasked fast path
            psum_ref[...] += _lane_fold(p)

        @pl.when(gidx >= first_pad_tile)
        def _tail():                         # only tiles containing padding
            valid = (t >= 0).astype(jnp.float32)   # (1, T)
            psum_ref[...] += _lane_fold(p * valid)


def dice_loss(logits: jax.Array, target: jax.Array, *,
              tile: int = 32 * 1024, num_chunks=None) -> jax.Array:
    """logits: (N, C) float (f32 or bf16), target: (N,) int class ids -> scalar."""
    n, c = logits.shape
    c_pad = max(8, _round_up(c, 8))          # fill the 8 sublanes

    # Token tile: multiple of 128 lanes, clamped to the data size.
    tile = _round_up(max(128, min(tile, _round_up(n, 128))), 128)
    n_tiles = -(-n // tile)

    # Leading 'parallel' chunk axis: lets Mosaic shard chunks across the two
    # TensorCores on v7x; near-zero cost on single-TC v5e/v6e.
    if num_chunks is None:
        num_chunks = 2 if n_tiles >= 2 else 1
    num_chunks = max(1, min(num_chunks, n_tiles))
    n_inner = -(-n_tiles // num_chunks)
    n_pad = num_chunks * n_inner * tile

    # Lane-dense layout: class on sublanes, tokens on lanes.  Single-pass pad
    # (no jnp.full + at[].set second HBM copy).
    xt = jnp.transpose(logits)                                   # (C, N)
    if (c_pad, n_pad) != (c, n):
        xt = jax.lax.pad(xt, jnp.asarray(_NEG_LOGIT, dtype=logits.dtype),
                         ((0, c_pad - c, 0), (0, n_pad - n, 0)))
    t2 = target.astype(jnp.int32).reshape(1, n)
    if n_pad != n:
        t2 = jax.lax.pad(t2, jnp.asarray(-1, dtype=jnp.int32),
                         ((0, 0, 0), (0, n_pad - n, 0)))

    # First global tile index that contains any padded token (None => none).
    first_pad_tile = (n // tile) if n_pad != n else None

    kernel = functools.partial(_dice_kernel, n_inner=n_inner,
                               first_pad_tile=first_pad_tile)

    # 32 MiB is ample for tile <= 64K lanes on every generation (v7x: 64 MiB
    # physical); only raise the scoped limit for very large tiles.
    vmem_limit = 32 * 1024 * 1024 if tile <= 64 * 1024 else 64 * 1024 * 1024

    part_shape = jax.ShapeDtypeStruct((num_chunks, c_pad, 128), jnp.float32)
    part_spec = pl.BlockSpec((None, c_pad, 128), lambda ck, i: (ck, 0, 0))

    inter_p, psum_p, tsum_p = pl.pallas_call(
        kernel,
        out_shape=[part_shape, part_shape, part_shape],
        grid_spec=pltpu.PrefetchScalarGridSpec(
            num_scalar_prefetch=0,
            grid=(num_chunks, n_inner),
            in_specs=[
                pl.BlockSpec((c_pad, tile), lambda ck, i: (0, ck * n_inner + i)),
                pl.BlockSpec((1, tile), lambda ck, i: (0, ck * n_inner + i)),
            ],
            out_specs=[part_spec, part_spec, part_spec],
        ),
        compiler_params=pltpu.CompilerParams(
            dimension_semantics=("parallel", "arbitrary"),
            vmem_limit_bytes=vmem_limit,
        ),
    )(xt, t2)

    # Tiny exact-f32 epilogue: cross-chunk + cross-lane reduce, drop padded
    # class rows, dice per class, sum over classes ('mean' of a scalar == it).
    inter = jnp.sum(inter_p, axis=(0, 2))[:c]
    psum = jnp.sum(psum_p, axis=(0, 2))[:c]
    tsum = jnp.sum(tsum_p, axis=(0, 2))[:c]
    # alpha == 0.0 -> focal factor is identity; square_denominator=False.
    loss_c = 1.0 - (2.0 * inter + SMOOTH) / (psum + tsum + SMOOTH)
    return jnp.sum(loss_c)


def dice_loss_ref(logits, target):
    """Pure-JAX reference mirroring the PyTorch forward (default config)."""
    _, c = logits.shape
    p = jax.nn.softmax(logits.astype(jnp.float32), axis=1)
    onehot = jax.nn.one_hot(target, c, dtype=jnp.float32)
    loss = jnp.float32(0.0)
    for idx in range(c):
        fi = p[:, idx]
        ft = onehot[:, idx]
        inter = jnp.sum(fi * ft)
        loss = loss + 1.0 - (2.0 * inter + SMOOTH) / (jnp.sum(fi) + jnp.sum(ft) + SMOOTH)
    return loss  # reduction='mean' of a scalar


if __name__ == "__main__":
    key = jax.random.PRNGKey(0)
    k1, k2, k3, k4, k5, k6, k7, k8 = jax.random.split(key, 8)

    # Tolerances relaxed slightly because the per-tile softmax uses the EUP
    # approximate reciprocal (~1e-3 relative error in p).
    ATOL = RTOL = 1e-2

    # Test 1: toy size, single tile, class-exact / token-padded (N=16 -> 128).
    N1, C1 = 16, 8
    logits1 = jax.random.normal(k1, (N1, C1), dtype=jnp.float32)
    target1 = jax.random.randint(k2, (N1,), 0, C1, dtype=jnp.int32)
    out1 = dice_loss(logits1, target1)
    jax.block_until_ready(out1)
    ref1 = dice_loss_ref(logits1, target1)
    assert jnp.allclose(out1, ref1, atol=ATOL, rtol=RTOL), (out1, ref1)

    # Test 2: multi-tile + 2 parallel chunks + class/token padding
    # (C=5 -> 8 sublanes, N=600, tile=256 -> 4 tiles across 2 chunks).
    N2, C2 = 600, 5
    logits2 = jax.random.normal(k3, (N2, C2), dtype=jnp.float32)
    target2 = jax.random.randint(k4, (N2,), 0, C2, dtype=jnp.int32)
    out2 = dice_loss(logits2, target2, tile=256)
    jax.block_until_ready(out2)
    ref2 = dice_loss_ref(logits2, target2)
    assert jnp.allclose(out2, ref2, atol=ATOL, rtol=RTOL), (out2, ref2)

    # Test 3: bf16 logits consumed directly (cast to f32 inside the kernel).
    N3, C3 = 300, 8
    logits3 = jax.random.normal(k5, (N3, C3), dtype=jnp.float32).astype(jnp.bfloat16)
    target3 = jax.random.randint(k6, (N3,), 0, C3, dtype=jnp.int32)
    out3 = dice_loss(logits3, target3, tile=128)
    jax.block_until_ready(out3)
    ref3 = dice_loss_ref(logits3, target3)
    assert jnp.allclose(out3, ref3, atol=ATOL, rtol=RTOL), (out3, ref3)

    # Test 4: moderate N exercising the default 32K-lane tile, both the
    # unmasked interior fast path and the masked tail tiles.
    N4, C4 = 70000, 8
    logits4 = jax.random.normal(k7, (N4, C4), dtype=jnp.float32)
    target4 = jax.random.randint(k8, (N4,), 0, C4, dtype=jnp.int32)
    out4 = dice_loss(logits4, target4)
    jax.block_until_ready(out4)
    ref4 = dice_loss_ref(logits4, target4)
    assert jnp.allclose(out4, ref4, atol=ATOL, rtol=RTOL), (out4, ref4)

    print("KERNEL_OK")
</pallas_src>

<mosaic_0001>
module attributes {stable_mosaic.version = 11 : i64} {
  func.func @_dice_kernel(%arg0: i32, %arg1: i32, %arg2: memref<8x128xf32, #tpu.memory_space<vmem>>, %arg3: memref<1x128xi32, #tpu.memory_space<vmem>>, %arg4: memref<1x8x128xf32, #tpu.memory_space<vmem>>, %arg5: memref<1x8x128xf32, #tpu.memory_space<vmem>>, %arg6: memref<1x8x128xf32, #tpu.memory_space<vmem>>) attributes {dimension_semantics = [#tpu.dimension_semantics<parallel>, #tpu.dimension_semantics<arbitrary>], iteration_bounds = array<i64: 1, 1>, scalar_prefetch = 0 : i64, scratch_operands = 0 : i64, tpu.core_type = #tpu.core_type<tc>, window_params = [{transform_indices = @transform_0, window_bounds = array<i64: 8, 128>}, {transform_indices = @transform_1, window_bounds = array<i64: 1, 128>}, {transform_indices = @transform_2, window_bounds = array<i64: 1, 8, 128>}, {transform_indices = @transform_3, window_bounds = array<i64: 1, 8, 128>}, {transform_indices = @transform_4, window_bounds = array<i64: 1, 8, 128>}]} {
    %c0_i32 = arith.constant 0 : i32
    %0 = arith.cmpi eq, %arg1, %c0_i32 : i32
    %1 = arith.extui %0 : i1 to i32
    %c0_i32_0 = arith.constant 0 : i32
    %2 = arith.cmpi ne, %1, %c0_i32_0 : i32
    scf.if %2 {
      %cst_21 = arith.constant 0.000000e+00 : f32
      %41 = vector.broadcast %cst_21 : f32 to vector<8x128xf32>
      %c0_22 = arith.constant 0 : index
      %c0_23 = arith.constant 0 : index
      %c0_24 = arith.constant 0 : index
      %42 = vector.load %arg4[%c0_22, %c0_23, %c0_24] : memref<1x8x128xf32, #tpu.memory_space<vmem>>, vector<1x8x128xf32>
      %43 = vector.shape_cast %42 : vector<1x8x128xf32> to vector<8x128xf32>
      %44 = vector.shape_cast %41 : vector<8x128xf32> to vector<1x8x128xf32>
      tpu.vector_store %arg4[%c0_22, %c0_23, %c0_24], %44 {strides = array<i32>} : memref<1x8x128xf32, #tpu.memory_space<vmem>>, vector<1x8x128xf32>,
      %cst_25 = arith.constant 0.000000e+00 : f32
      %45 = vector.broadcast %cst_25 : f32 to vector<8x128xf32>
      %c0_26 = arith.constant 0 : index
      %c0_27 = arith.constant 0 : index
      %c0_28 = arith.constant 0 : index
      %46 = vector.load %arg5[%c0_26, %c0_27, %c0_28] : memref<1x8x128xf32, #tpu.memory_space<vmem>>, vector<1x8x128xf32>
      %47 = vector.shape_cast %46 : vector<1x8x128xf32> to vector<8x128xf32>
      %48 = vector.shape_cast %45 : vector<8x128xf32> to vector<1x8x128xf32>
      tpu.vector_store %arg5[%c0_26, %c0_27, %c0_28], %48 {strides = array<i32>} : memref<1x8x128xf32, #tpu.memory_space<vmem>>, vector<1x8x128xf32>,
      %cst_29 = arith.constant 0.000000e+00 : f32
      %49 = vector.broadcast %cst_29 : f32 to vector<8x128xf32>
      %c0_30 = arith.constant 0 : index
      %c0_31 = arith.constant 0 : index
      %c0_32 = arith.constant 0 : index
      %50 = vector.load %arg6[%c0_30, %c0_31, %c0_32] : memref<1x8x128xf32, #tpu.memory_space<vmem>>, vector<1x8x128xf32>
      %51 = vector.shape_cast %50 : vector<1x8x128xf32> to vector<8x128xf32>
      %52 = vector.shape_cast %49 : vector<8x128xf32> to vector<1x8x128xf32>
      tpu.vector_store %arg6[%c0_30, %c0_31, %c0_32], %52 {strides = array<i32>} : memref<1x8x128xf32, #tpu.memory_space<vmem>>, vector<1x8x128xf32>,
    } else {
    }
    %c0 = arith.constant 0 : index
    %c0_1 = arith.constant 0 : index
    %3 = vector.load %arg2[%c0, %c0_1] : memref<8x128xf32, #tpu.memory_space<vmem>>, vector<8x128xf32>
    %c0_2 = arith.constant 0 : index
    %c0_3 = arith.constant 0 : index
    %4 = vector.load %arg3[%c0_2, %c0_3] : memref<1x128xi32, #tpu.memory_space<vmem>>, vector<1x128xi32>
    %cst = arith.constant dense<0xFF800000> : vector<128xf32>
    %5 = vector.multi_reduction <maximumf>, %3, %cst [0] : vector<8x128xf32> to vector<128xf32>
    %6 = vector.shape_cast %5 : vector<128xf32> to vector<1x128xf32>
    %7 = vector.broadcast %6 : vector<1x128xf32> to vector<8x128xf32>
    %8 = arith.subf %3, %7 : vector<8x128xf32>
    %9 = math.exp %8 : vector<8x128xf32>
    %cst_4 = arith.constant dense<0.000000e+00> : vector<128xf32>
    %10 = vector.multi_reduction <add>, %9, %cst_4 [0] : vector<8x128xf32> to vector<128xf32>
    %11 = vector.shape_cast %10 : vector<128xf32> to vector<1x128xf32>
    %12 = tpu.reciprocal %11 {approx = true} : vector<1x128xf32> -> vector<1x128xf32>
    %13 = vector.broadcast %12 : vector<1x128xf32> to vector<8x128xf32>
    %14 = arith.mulf %9, %13 : vector<8x128xf32>
    %15 = tpu.iota {dimensions = array<i32: 0>} : vector<8x128xi32>
    %16 = vector.broadcast %4 : vector<1x128xi32> to vector<8x128xi32>
    %17 = arith.cmpi eq, %15, %16 : vector<8x128xi32>
    %18 = arith.extui %17 : vector<8x128xi1> to vector<8x128xi32>
    %19 = arith.sitofp %18 : vector<8x128xi32> to vector<8x128xf32>
    %c0_5 = arith.constant 0 : index
    %c0_6 = arith.constant 0 : index
    %c0_7 = arith.constant 0 : index
    %20 = vector.load %arg4[%c0_5, %c0_6, %c0_7] : memref<1x8x128xf32, #tpu.memory_space<vmem>>, vector<1x8x128xf32>
    %21 = vector.shape_cast %20 : vector<1x8x128xf32> to vector<8x128xf32>
    %22 = arith.mulf %14, %19 : vector<8x128xf32>
    %23 = arith.addf %21, %22 : vector<8x128xf32>
    %c0_8 = arith.constant 0 : index
    %c0_9 = arith.constant 0 : index
    %c0_10 = arith.constant 0 : index
    %24 = vector.load %arg4[%c0_8, %c0_9, %c0_10] : memref<1x8x128xf32, #tpu.memory_space<vmem>>, vector<1x8x128xf32>
    %25 = vector.shape_cast %24 : vector<1x8x128xf32> to vector<8x128xf32>
    %26 = vector.shape_cast %23 : vector<8x128xf32> to vector<1x8x128xf32>
    tpu.vector_store %arg4[%c0_8, %c0_9, %c0_10], %26 {strides = array<i32>} : memref<1x8x128xf32, #tpu.memory_space<vmem>>, vector<1x8x128xf32>,
    %c0_11 = arith.constant 0 : index
    %c0_12 = arith.constant 0 : index
    %c0_13 = arith.constant 0 : index
    %27 = vector.load %arg6[%c0_11, %c0_12, %c0_13] : memref<1x8x128xf32, #tpu.memory_space<vmem>>, vector<1x8x128xf32>
    %28 = vector.shape_cast %27 : vector<1x8x128xf32> to vector<8x128xf32>
    %29 = arith.addf %28, %19 : vector<8x128xf32>
    %c0_14 = arith.constant 0 : index
    %c0_15 = arith.constant 0 : index
    %c0_16 = arith.constant 0 : index
    %30 = vector.load %arg6[%c0_14, %c0_15, %c0_16] : memref<1x8x128xf32, #tpu.memory_space<vmem>>, vector<1x8x128xf32>
    %31 = vector.shape_cast %30 : vector<1x8x128xf32> to vector<8x128xf32>
    %32 = vector.shape_cast %29 : vector<8x128xf32> to vector<1x8x128xf32>
    tpu.vector_store %arg6[%c0_14, %c0_15, %c0_16], %32 {strides = array<i32>} : memref<1x8x128xf32, #tpu.memory_space<vmem>>, vector<1x8x128xf32>,
    %c1_i32 = arith.constant 1 : i32
    %33 = arith.muli %arg0, %c1_i32 : i32
    %34 = arith.addi %33, %arg1 : i32
    %c0_i32_17 = arith.constant 0 : i32
    %35 = arith.cmpi slt, %34, %c0_i32_17 : i32
    %36 = arith.extui %35 : i1 to i32
    %c0_i32_18 = arith.constant 0 : i32
    %37 = arith.cmpi ne, %36, %c0_i32_18 : i32
    scf.if %37 {
      %c0_21 = arith.constant 0 : index
      %c0_22 = arith.constant 0 : index
      %c0_23 = arith.constant 0 : index
      %41 = vector.load %arg5[%c0_21, %c0_22, %c0_23] : memref<1x8x128xf32, #tpu.memory_space<vmem>>, vector<1x8x128xf32>
      %42 = vector.shape_cast %41 : vector<1x8x128xf32> to vector<8x128xf32>
      %43 = arith.addf %42, %14 : vector<8x128xf32>
      %c0_24 = arith.constant 0 : index
      %c0_25 = arith.constant 0 : index
      %c0_26 = arith.constant 0 : index
      %44 = vector.load %arg5[%c0_24, %c0_25, %c0_26] : memref<1x8x128xf32, #tpu.memory_space<vmem>>, vector<1x8x128xf32>
      %45 = vector.shape_cast %44 : vector<1x8x128xf32> to vector<8x128xf32>
      %46 = vector.shape_cast %43 : vector<8x128xf32> to vector<1x8x128xf32>
      tpu.vector_store %arg5[%c0_24, %c0_25, %c0_26], %46 {strides = array<i32>} : memref<1x8x128xf32, #tpu.memory_space<vmem>>, vector<1x8x128xf32>,
    } else {
    }
    %c0_i32_19 = arith.constant 0 : i32
    %38 = arith.cmpi sge, %34, %c0_i32_19 : i32
    %39 = arith.extui %38 : i1 to i32
    %c0_i32_20 = arith.constant 0 : i32
    %40 = arith.cmpi ne, %39, %c0_i32_20 : i32
    scf.if %40 {
      %c0_i32_21 = arith.constant 0 : i32
      %41 = vector.broadcast %c0_i32_21 : i32 to vector<1x128xi32>
      %42 = arith.cmpi sge, %4, %41 : vector<1x128xi32>
      %43 = arith.extui %42 : vector<1x128xi1> to vector<1x128xi32>
      %44 = arith.sitofp %43 : vector<1x128xi32> to vector<1x128xf32>
      %c0_22 = arith.constant 0 : index
      %c0_23 = arith.constant 0 : index
      %c0_24 = arith.constant 0 : index
      %45 = vector.load %arg5[%c0_22, %c0_23, %c0_24] : memref<1x8x128xf32, #tpu.memory_space<vmem>>, vector<1x8x128xf32>
      %46 = vector.shape_cast %45 : vector<1x8x128xf32> to vector<8x128xf32>
      %47 = vector.broadcast %44 : vector<1x128xf32> to vector<8x128xf32>
      %48 = arith.mulf %14, %47 : vector<8x128xf32>
      %49 = arith.addf %46, %48 : vector<8x128xf32>
      %c0_25 = arith.constant 0 : index
      %c0_26 = arith.constant 0 : index
      %c0_27 = arith.constant 0 : index
      %50 = vector.load %arg5[%c0_25, %c0_26, %c0_27] : memref<1x8x128xf32, #tpu.memory_space<vmem>>, vector<1x8x128xf32>
      %51 = vector.shape_cast %50 : vector<1x8x128xf32> to vector<8x128xf32>
      %52 = vector.shape_cast %49 : vector<8x128xf32> to vector<1x8x128xf32>
      tpu.vector_store %arg5[%c0_25, %c0_26, %c0_27], %52 {strides = array<i32>} : memref<1x8x128xf32, #tpu.memory_space<vmem>>, vector<1x8x128xf32>,
    } else {
    }
    return
  }
  func.func @transform_0(%arg0: i32, %arg1: i32) -> (i32, i32) {
    %c1_i32 = arith.constant 1 : i32
    %0 = arith.muli %arg0, %c1_i32 : i32
    %1 = arith.addi %0, %arg1 : i32
    %c0_i32 = arith.constant 0 : i32
    %c0_i32_0 = arith.constant 0 : i32
    return %c0_i32, %1 : i32, i32
  }
  func.func @transform_1(%arg0: i32, %arg1: i32) -> (i32, i32) {
    %c1_i32 = arith.constant 1 : i32
    %0 = arith.muli %arg0, %c1_i32 : i32
    %1 = arith.addi %0, %arg1 : i32
    %c0_i32 = arith.constant 0 : i32
    %c0_i32_0 = arith.constant 0 : i32
    return %c0_i32, %1 : i32, i32
  }
  func.func @transform_2(%arg0: i32, %arg1: i32) -> (i32, i32, i32) {
    %c0_i32 = arith.constant 0 : i32
    %c0_i32_0 = arith.constant 0 : i32
    %c0_i32_1 = arith.constant 0 : i32
    return %arg0, %c0_i32, %c0_i32_0 : i32, i32, i32
  }
  func.func @transform_3(%arg0: i32, %arg1: i32) -> (i32, i32, i32) {
    %c0_i32 = arith.constant 0 : i32
    %c0_i32_0 = arith.constant 0 : i32
    %c0_i32_1 = arith.constant 0 : i32
    return %arg0, %c0_i32, %c0_i32_0 : i32, i32, i32
  }
  func.func @transform_4(%arg0: i32, %arg1: i32) -> (i32, i32, i32) {
    %c0_i32 = arith.constant 0 : i32
    %c0_i32_0 = arith.constant 0 : i32
    %c0_i32_1 = arith.constant 0 : i32
    return %arg0, %c0_i32, %c0_i32_0 : i32, i32, i32
  }
}

</mosaic_0001>

<bundles_post_ra>
// kernel: tpu_custom_call.1
= control target key start
LH: loop header
LB: loop body
LE: loop exit
PB: predicated region body
PF: predicated region fallthrough
CT: control target
= control target key end

     0   :  { %10 = vsyncpa [#allocation3], 0  ;;  %s300_s0 = inlined_call_operand.hbm [shape: f32[8,128], index: 0, kind: input, shape index: {}]   ;;  %s301_s1 = inlined_call_operand.vmem [shape: s32[1,128], index: 1, kind: input, shape index: {}]   ;;  %s302_s2 = inlined_call_operand.hbm [shape: f32[1,8,128], index: 2, kind: output, shape index: {0}]   ;;  %s303_s3 = inlined_call_operand.hbm [shape: f32[1,8,128], index: 3, kind: output, shape index: {1}]   ;;  %s304_s4 = inlined_call_operand.hbm [shape: f32[1,8,128], index: 4, kind: output, shape index: {2}]  }
   0x1   :  { %11 = vsyncpa [#allocation4], 0 }
   0x2   :  { %12 = vsyncpa [#allocation7], 0  ;;  %s255_s15 = smov [#allocation2]  }
   0x3   :  { %s22_s16 = sshll.u32 %s255_s15, 4  ;;  %s23_s16 = int_to_ptr.vmem [resolvable:$true] %s22_s16 }
   0x4   :  { %s177_s17 = scalar_lea.vmem %s23_s16, 128  ;;  %p182_p1 = scmp.lt.s32.totalorder %s23_s16, %s23_s16 }
   0x5   :  { %p178_p0 = scmp.ne.s32.totalorder %s23_s16, %s177_s17  ;;  %p183_p2 = scmp.lt.s32.totalorder %s177_s17, %s177_s17 }
   0x7   :  { %p184_p3 = por %p183_p2, %p182_p1 }
   0x9   :  { %p185_p4 = pnand %p184_p3, %p178_p0 }
   0xb   :  { %188 = shalt.err (!%p185_p4)
}
   0xc   :  { %25 = dma.hbm_to_vmem [thread:$0]  %s300_s0, 128, %s23_s16, [#allocation3]  }
   0xd   :  { %249 = dma.done.wait [#allocation3], 128  }
   0xe   :  { %250 = vsyncadd [#allocation3], 4294967168  ;;  %v72_v0 = vlaneseq  ;;  %v53_v3 = vld [vmem:[#allocation2] sm:$0xff]  ;;  %v256_v8 = vmov 0.0   ;;  %s257_s0 = smov [#allocation6]   ;;  %s258_s22 = smov [#allocation5]  }
   0xf   :  { %v54_v4 = vld [vmem:[%s301_s1] sm:$0x1]  ;;  %v55_v5 = vrot.slane %v53_v3, 4  ;;  %s129_s1 = sshll.u32 %s257_s0, 4  ;;  %s119_s23 = sshll.u32 %s258_s22, 4  ;;  %s130_s1 = int_to_ptr.vmem [resolvable:$true] %s129_s1  ;;  %s120_s23 = int_to_ptr.vmem [resolvable:$true] %s119_s23 }
  0x10   :  { %v73_v1 = vshrl.u32 %v72_v0, 7  ;;  %vm100_vm1 = vcmp.ge.s32.totalorder %v54_v4, 0  ;;  %s259_s24 = smov [#allocation8]   ;;  %s189_s26 = scalar_lea.vmem %s130_s1, 128 }
  0x11   :  { %v56_v7 = vmax.f32 %v53_v3, %v55_v5  ;;  %v159_v23 = vsel %vm100_vm1, 1.0, %v256_v8  ;;  %s139_s25 = sshll.u32 %s259_s24, 4  ;;  %p190_p5 = scmp.ne.s32.totalorder %s130_s1, %s189_s26  ;;  %s140_s25 = int_to_ptr.vmem [resolvable:$true] %s139_s25 }
  0x12   :  { %v76_v2 = vsub.s32 0, %v73_v1  ;;  %p194_p6 = scmp.lt.s32.totalorder %s130_s1, %s130_s1  ;;  %p195_p7 = scmp.lt.s32.totalorder %s189_s26, %s189_s26 }
  0x13   :  { %v57_v10 = vrot.slane %v56_v7, 2 }
  0x14   :  { %v77_v6 = vrot.slane %v54_v4, %v76_v2  ;;  %v108_v24 = vrot.slane %v159_v23, %v76_v2  ;;  %p196_p8 = por %p195_p7, %p194_p6 }
  0x15   :  { %v58_v11 = vmax.f32 %v56_v7, %v57_v10 }
  0x16   :  { %vm78_vm0 = vcmp.eq.s32.totalorder %v73_v1, %v77_v6  ;;  %p197_p9 = pnand %p196_p8, %p190_p5 }
  0x17   :  { %v158_v9 = vsel %vm78_vm0, 1.0, %v256_v8  ;;  %v59_v12 = vrot.slane %v58_v11, 1 }
  0x18   :  { %87 = vst [vmem:[#allocation8] sm:$0xff] %v158_v9 }
  0x19   :  { %v60_v13 = vmax.f32 %v58_v11, %v59_v12 }
  0x1b   :  { %v61_v14 = vsub.f32 %v53_v3, %v60_v13 }
  0x1d   :  { %v62_v15 = vmul.f32 1.442695, %v61_v14 }
  0x1f   :  { %165 = vpow2.f32 %v62_v15 }
  0x2c   :  { %v166_v16 = vpop.eup %165 }
  0x2d   :  { %v64_v17 = vrot.slane %v166_v16, 4 }
  0x2f   :  { %v65_v18 = vadd.f32 %v166_v16, %v64_v17 }
  0x31   :  { %v66_v19 = vrot.slane %v65_v18, 2 }
  0x33   :  { %v67_v20 = vadd.f32 %v66_v19, %v65_v18 }
  0x35   :  { %v68_v21 = vrot.slane %v67_v20, 1 }
  0x37   :  { %v69_v22 = vadd.f32 %v68_v21, %v67_v20 }
  0x39   :  { %167 = vrcp.f32 %v69_v22 }
  0x46   :  { %v168_v25 = vpop.eup %167 }
  0x47   :  { %v71_v26 = vmul.f32 %v168_v25, %v166_v16 }
  0x49   :  { %v110_v27 = vmul.f32 %v108_v24, %v71_v26  ;;  %v82_v28 = vmul.f32 %v158_v9, %v71_v26 }
  0x4b   :  { %112 = vst [vmem:[#allocation6] sm:$0xff] %v110_v27  ;;  %84 = vst [vmem:[#allocation5] sm:$0xff] %v82_v28 }
  0x4c   :  { %200 = shalt.err (!%p197_p9)
}
  0x4d   :  { %132 = dma.vmem_to_hbm [thread:$0]  %s130_s1, 128, %s303_s3, [#allocation7]  }
  0x4e   :  { %s209_s29 = scalar_lea.vmem %s120_s23, 128  ;;  %p214_p11 = scmp.lt.s32.totalorder %s120_s23, %s120_s23 }
  0x4f   :  { %p210_p10 = scmp.ne.s32.totalorder %s120_s23, %s209_s29  ;;  %p215_p12 = scmp.lt.s32.totalorder %s209_s29, %s209_s29 }
  0x51   :  { %p216_p13 = por %p215_p12, %p214_p11 }
  0x53   :  { %p217_p0 = pnand %p216_p13, %p210_p10 }
  0x55   :  { %220 = shalt.err (!%p217_p0)
}
  0x56   :  { %122 = dma.vmem_to_hbm [thread:$0]  %s120_s23, 128, %s302_s2, [#allocation4]  }
  0x57   :  { %s229_s6 = scalar_lea.vmem %s140_s25, 128  ;;  %p234_p2 = scmp.lt.s32.totalorder %s140_s25, %s140_s25 }
  0x58   :  { %p230_p1 = scmp.ne.s32.totalorder %s140_s25, %s229_s6  ;;  %p235_p3 = scmp.lt.s32.totalorder %s229_s6, %s229_s6 }
  0x5a   :  { %p236_p4 = por %p235_p3, %p234_p2 }
  0x5c   :  { %p237_p5 = pnand %p236_p4, %p230_p1 }
  0x5e   :  { %240 = shalt.err (!%p237_p5)
}
  0x5f   :  { %142 = dma.vmem_to_hbm [thread:$0]  %s140_s25, 128, %s304_s4, [#allocation7]  }
  0x60   :  { %251 = dma.done.wait [#allocation4], 128  }
  0x61   :  { %252 = vsyncadd [#allocation4], 4294967168 }
  0x62   :  { %253 = dma.done.wait [#allocation7], 256  }
  0x63   :  { %254 = vsyncadd [#allocation7], 4294967040 }
  0x64   :  { %152 = vsyncpa [#allocation3], 1 }
  0x65   :  { %153 = vsyncpa [#allocation4], 1 }
  0x66   :  { %154 = vsyncpa [#allocation7], 1 }

</bundles_post_ra>
